<compile_context>
chip_gen: v7x
topology: tpu7x:2x2x1
jax: 0.10.0
libtpu: 0.0.40
codegen_flags: <defaults>
</compile_context>

<pallas_src>
import functools

import jax
import jax.numpy as jnp
from jax.experimental import pallas as pl
from jax.experimental.pallas import tpu as pltpu


def _smooth_loss_kernel(pred_ref, img_ref, out_ref, *, gamma_rate, relative_smo):
    # Block shapes: pred (1, TB, Cp, H, W), img (1, TB, Ci, H, W), out (1, TB, H, W).
    _, TB, Cp, H, W = pred_ref.shape
    Ci = img_ref.shape[2]
    R = TB * H  # rows of the 2-D working view (sublane axis)

    def diffs(x2):
        # Replication-padded backward differences along W (lane roll) and H
        # (sublane roll).  Wrapped values only ever land on positions that are
        # either masked out (pred grads) or multiply an exact zero (img weights).
        dw = jnp.abs(x2 - pltpu.roll(x2, 1, axis=1))
        dh = jnp.abs(x2 - pltpu.roll(x2, 1, axis=0))
        return dw, dh

    # --- prediction gradients (channel mean accumulated over the static Cp) ---
    grad_w = grad_h = None
    for c in range(Cp):
        p = pred_ref[0, :, c, :, :].astype(jnp.float32)            # (TB, H, W)
        if relative_smo:
            m = jnp.sum(jnp.sum(p, axis=2, keepdims=True), axis=1, keepdims=True)
            m = m * (1.0 / (H * W))                                # per-sample spatial mean
            p = p * pl.reciprocal(m + 1e-7, approx=False)          # EUP, off the VALU path
        dw, dh = diffs(p.reshape(R, W))                            # free reshape when H % 8 == 0
        grad_w = dw if grad_w is None else grad_w + dw
        grad_h = dh if grad_h is None else grad_h + dh
    if Cp > 1:
        grad_w = grad_w * (1.0 / Cp)
        grad_h = grad_h * (1.0 / Cp)

    # --- image gradients -> edge-aware weights --------------------------------
    # NOTE: the reference adds per-channel constants (m_rgb) before the finite
    # differences; constants cancel exactly, so that step is omitted.  The
    # channel mean is folded into the exp scale: exp(-g*mean) == exp((-g/Ci)*sum).
    sw = sh = None
    for c in range(Ci):
        i2 = img_ref[0, :, c, :, :].astype(jnp.float32).reshape(R, W)
        dw, dh = diffs(i2)
        sw = dw if sw is None else sw + dw
        sh = dh if sh is None else sh + dh
    neg_scale = -float(gamma_rate) / Ci
    w_weight = jnp.exp(neg_scale * sw)                             # (R, W)
    h_weight = jnp.exp(neg_scale * sh)

    # --- boundary masks (replicated-boundary gradient is exactly zero) --------
    gw3 = (grad_w * w_weight).reshape(TB, H, W)
    gh3 = (grad_h * h_weight).reshape(TB, H, W)
    col = jax.lax.broadcasted_iota(jnp.int32, (TB, H, W), 2)
    row = jax.lax.broadcasted_iota(jnp.int32, (TB, H, W), 1)
    out3 = jnp.where(col > 0, gw3, 0.0) + jnp.where(row > 0, gh3, 0.0)
    out_ref[0] = out3.astype(out_ref.dtype)


def _round_up(x, m):
    return ((x + m - 1) // m) * m


def _padded_plane_bytes(h, w, itemsize):
    """VMEM bytes of one (h, w) plane after sublane/lane tile padding."""
    sublane = {4: 8, 2: 16, 1: 32}.get(int(itemsize), 8)
    return _round_up(h, sublane) * _round_up(w, 128) * int(itemsize)


def _chip_caps():
    """(physical VMEM bytes, #TensorCores) with conservative fallbacks."""
    kind = ""
    try:
        kind = (jax.devices()[0].device_kind or "").lower()
    except Exception:
        pass
    is_v7 = ("v7" in kind) or ("7x" in kind) or ("tpu7" in kind)
    vmem_bytes = (64 << 20) if is_v7 else (128 << 20)
    try:
        info = pltpu.get_tpu_info()
        vmem_bytes = int(getattr(info, "vmem_capacity_bytes", vmem_bytes))
    except Exception:
        pass
    return vmem_bytes, (2 if is_v7 else 1)


def _pick_block_b(batch, per_sample_vmem_bytes, vmem_budget, num_tc):
    """Samples per grid step: biggest block that fits the VMEM budget.

    On single-TC chips (v5e/v6e) there is no ">=2 grid steps" cap (fat blocks
    amortize the ~0.35us/step overhead and fatten DMAs); on 2-TC v7x keep at
    least 2 parallel steps so both TensorCores get work.
    """
    max_tb = max(1, int(vmem_budget // max(per_sample_vmem_bytes, 1)))
    tb = min(batch, max_tb)
    if num_tc >= 2 and batch >= 2:
        tb = min(tb, (batch + 1) // 2)
    while batch % tb:
        tb -= 1
    return max(1, int(tb))


def smooth_loss(pred, img, *, gamma_rate=1.0, relative_smo=False,
                block_b=None, out_dtype=jnp.float32):
    """pred: (B, map_ch, H, W), img: (B, 3, H, W) -> (B, 1, H, W).

    bf16 or f32 inputs pass straight through; compute is f32 in-kernel.
    """
    B, Cp, H, W = pred.shape
    Bi, Ci, Hi, Wi = img.shape
    if (Bi, Hi, Wi) != (B, H, W):
        # TODO(synk): bilinear F.interpolate resize path not implemented.
        raise ValueError("pred and img must share (B, H, W)")

    # Padded-VMEM accounting: double-buffered in/out blocks + live f32 planes.
    pred_plane = _padded_plane_bytes(H, W, pred.dtype.itemsize)
    img_plane = _padded_plane_bytes(H, W, img.dtype.itemsize)
    f32_plane = _padded_plane_bytes(H, W, 4)
    out_plane = _padded_plane_bytes(H, W, jnp.dtype(out_dtype).itemsize)
    per_sample = 2 * (Cp * pred_plane + Ci * img_plane + out_plane) + 6 * f32_plane

    vmem_phys, num_tc = _chip_caps()
    vmem_budget = max(min(vmem_phys - (12 << 20), 96 << 20), 32 << 20)

    if block_b is None:
        block_b = _pick_block_b(B, per_sample, vmem_budget, num_tc)
    TB = int(block_b)
    assert B % TB == 0, "block_b must divide the batch"
    G = B // TB

    # Pure reshapes of the natural NCHW layout (no copies, no transposes).
    pred_k = pred.reshape(G, TB, Cp, H, W)
    img_k = img.reshape(G, TB, Ci, H, W)

    kernel = functools.partial(
        _smooth_loss_kernel,
        gamma_rate=float(gamma_rate),
        relative_smo=bool(relative_smo),
    )

    vmem_limit = int(min(max(vmem_budget, TB * per_sample), vmem_phys - (4 << 20)))

    out = pl.pallas_call(
        kernel,
        out_shape=jax.ShapeDtypeStruct((G, TB, H, W), out_dtype),
        grid_spec=pltpu.PrefetchScalarGridSpec(
            num_scalar_prefetch=0,
            grid=(G,),
            in_specs=[
                pl.BlockSpec((1, TB, Cp, H, W), lambda g: (g, 0, 0, 0, 0)),
                pl.BlockSpec((1, TB, Ci, H, W), lambda g: (g, 0, 0, 0, 0)),
            ],
            out_specs=pl.BlockSpec((1, TB, H, W), lambda g: (g, 0, 0, 0)),
        ),
        compiler_params=pltpu.CompilerParams(
            dimension_semantics=("parallel",),
            vmem_limit_bytes=vmem_limit,
        ),
    )(pred_k, img_k)
    return out.reshape(B, 1, H, W)


def smooth_loss_ref(pred, img, *, gamma_rate=1.0, relative_smo=False):
    """Pure-JAX reference mirroring the PyTorch forward (for verification)."""
    pred = pred.astype(jnp.float32)
    img = img.astype(jnp.float32)
    if relative_smo:
        pred = pred / (pred.mean(axis=(2, 3), keepdims=True) + 1e-7)
    m_rgb = jnp.array([0.411, 0.432, 0.45], jnp.float32)[None, :, None, None]
    img = img + m_rgb

    def pad(x):
        return jnp.pad(x, ((0, 0), (0, 0), (1, 1), (1, 1)), mode="edge")

    pp, ip = pad(pred), pad(img)
    gw = jnp.abs(pp[:, :, 1:-1, 1:-1] - pp[:, :, 1:-1, :-2]).mean(axis=1, keepdims=True)
    gh = jnp.abs(pp[:, :, 1:-1, 1:-1] - pp[:, :, :-2, 1:-1]).mean(axis=1, keepdims=True)
    giw = jnp.abs(ip[:, :, 1:-1, 1:-1] - ip[:, :, 1:-1, :-2]).mean(axis=1, keepdims=True)
    gih = jnp.abs(ip[:, :, 1:-1, 1:-1] - ip[:, :, :-2, 1:-1]).mean(axis=1, keepdims=True)
    return gw * jnp.exp(-gamma_rate * giw) + gh * jnp.exp(-gamma_rate * gih)


if __name__ == "__main__":
    key = jax.random.PRNGKey(0)
    k1, k2, k3, k4 = jax.random.split(key, 4)

    # Config 1: stated config (map_ch=1), image-guided; both relative_smo paths.
    B, Cp, H, W = 2, 1, 16, 128
    pred = jax.random.uniform(k1, (B, Cp, H, W), dtype=jnp.float32)
    img = jax.random.uniform(k2, (B, 3, H, W), dtype=jnp.float32)
    for rel in (False, True):
        out = jax.block_until_ready(
            smooth_loss(pred, img, gamma_rate=1.0, relative_smo=rel))
        ref = smooth_loss_ref(pred, img, gamma_rate=1.0, relative_smo=rel)
        assert out.shape == (B, 1, H, W)
        assert jnp.allclose(out, ref, atol=1e-5, rtol=1e-5), (
            f"mismatch vs reference (relative_smo={rel})")

    # Config 2: multi-channel pred, different spatial size and gamma.
    B2, Cp2, H2, W2 = 4, 2, 8, 256
    pred2 = jax.random.uniform(k3, (B2, Cp2, H2, W2), dtype=jnp.float32)
    img2 = jax.random.uniform(k4, (B2, 3, H2, W2), dtype=jnp.float32)
    out2 = jax.block_until_ready(smooth_loss(pred2, img2, gamma_rate=0.5))
    ref2 = smooth_loss_ref(pred2, img2, gamma_rate=0.5)
    assert out2.shape == (B2, 1, H2, W2)
    assert jnp.allclose(out2, ref2, atol=1e-5, rtol=1e-5), "mismatch (multi-channel)"

    # Config 3: bf16 inputs straight through (kernel upcasts; ref sees the same
    # rounded values, so the comparison stays tight).
    pred_bf = pred.astype(jnp.bfloat16)
    img_bf = img.astype(jnp.bfloat16)
    out_bf = jax.block_until_ready(smooth_loss(pred_bf, img_bf, gamma_rate=1.0))
    ref_bf = smooth_loss_ref(pred_bf, img_bf, gamma_rate=1.0)
    assert jnp.allclose(out_bf, ref_bf, atol=1e-5, rtol=1e-5), "mismatch (bf16 inputs)"

    print("KERNEL_OK")
</pallas_src>

<mosaic_0001>
module attributes {stable_mosaic.version = 11 : i64} {
  func.func @_smooth_loss_kernel(%arg0: i32, %arg1: memref<1x2x1x16x128xf32, #tpu.memory_space<vmem>>, %arg2: memref<1x2x3x16x128xf32, #tpu.memory_space<vmem>>, %arg3: memref<1x2x16x128xf32, #tpu.memory_space<vmem>>) attributes {dimension_semantics = [#tpu.dimension_semantics<parallel>], iteration_bounds = array<i64: 1>, scalar_prefetch = 0 : i64, scratch_operands = 0 : i64, tpu.core_type = #tpu.core_type<tc>, window_params = [{transform_indices = @transform_0, window_bounds = array<i64: 1, 2, 1, 16, 128>}, {transform_indices = @transform_1, window_bounds = array<i64: 1, 2, 3, 16, 128>}, {transform_indices = @transform_2, window_bounds = array<i64: 1, 2, 16, 128>}]} {
    %c0 = arith.constant 0 : index
    %c0_0 = arith.constant 0 : index
    %c0_1 = arith.constant 0 : index
    %c0_2 = arith.constant 0 : index
    %c0_3 = arith.constant 0 : index
    %0 = vector.load %arg1[%c0, %c0_0, %c0_1, %c0_2, %c0_3] : memref<1x2x1x16x128xf32, #tpu.memory_space<vmem>>, vector<1x2x1x16x128xf32>
    %1 = vector.shape_cast %0 : vector<1x2x1x16x128xf32> to vector<2x16x128xf32>
    %2 = vector.shape_cast %1 : vector<2x16x128xf32> to vector<32x128xf32>
    %c1_i32 = arith.constant 1 : i32
    %3 = tpu.dynamic_rotate %2 by %c1_i32 dim 1 : vector<32x128xf32>, i32 -> vector<32x128xf32>
    %4 = arith.subf %2, %3 : vector<32x128xf32>
    %5 = math.absf %4 : vector<32x128xf32>
    %c1_i32_4 = arith.constant 1 : i32
    %6 = tpu.dynamic_rotate %2 by %c1_i32_4 dim 0 : vector<32x128xf32>, i32 -> vector<32x128xf32>
    %7 = arith.subf %2, %6 : vector<32x128xf32>
    %8 = math.absf %7 : vector<32x128xf32>
    %c0_5 = arith.constant 0 : index
    %c0_6 = arith.constant 0 : index
    %c0_7 = arith.constant 0 : index
    %c0_8 = arith.constant 0 : index
    %c0_9 = arith.constant 0 : index
    %9 = vector.load %arg2[%c0_5, %c0_6, %c0_7, %c0_8, %c0_9] : memref<1x2x3x16x128xf32, #tpu.memory_space<vmem>>, vector<1x2x1x16x128xf32>
    %10 = vector.shape_cast %9 : vector<1x2x1x16x128xf32> to vector<2x16x128xf32>
    %11 = vector.shape_cast %10 : vector<2x16x128xf32> to vector<32x128xf32>
    %c1_i32_10 = arith.constant 1 : i32
    %12 = tpu.dynamic_rotate %11 by %c1_i32_10 dim 1 : vector<32x128xf32>, i32 -> vector<32x128xf32>
    %13 = arith.subf %11, %12 : vector<32x128xf32>
    %14 = math.absf %13 : vector<32x128xf32>
    %c1_i32_11 = arith.constant 1 : i32
    %15 = tpu.dynamic_rotate %11 by %c1_i32_11 dim 0 : vector<32x128xf32>, i32 -> vector<32x128xf32>
    %16 = arith.subf %11, %15 : vector<32x128xf32>
    %17 = math.absf %16 : vector<32x128xf32>
    %c0_12 = arith.constant 0 : index
    %c0_13 = arith.constant 0 : index
    %c1 = arith.constant 1 : index
    %c0_14 = arith.constant 0 : index
    %c0_15 = arith.constant 0 : index
    %18 = vector.load %arg2[%c0_12, %c0_13, %c1, %c0_14, %c0_15] : memref<1x2x3x16x128xf32, #tpu.memory_space<vmem>>, vector<1x2x1x16x128xf32>
    %19 = vector.shape_cast %18 : vector<1x2x1x16x128xf32> to vector<2x16x128xf32>
    %20 = vector.shape_cast %19 : vector<2x16x128xf32> to vector<32x128xf32>
    %c1_i32_16 = arith.constant 1 : i32
    %21 = tpu.dynamic_rotate %20 by %c1_i32_16 dim 1 : vector<32x128xf32>, i32 -> vector<32x128xf32>
    %22 = arith.subf %20, %21 : vector<32x128xf32>
    %23 = math.absf %22 : vector<32x128xf32>
    %c1_i32_17 = arith.constant 1 : i32
    %24 = tpu.dynamic_rotate %20 by %c1_i32_17 dim 0 : vector<32x128xf32>, i32 -> vector<32x128xf32>
    %25 = arith.subf %20, %24 : vector<32x128xf32>
    %26 = math.absf %25 : vector<32x128xf32>
    %27 = arith.addf %14, %23 : vector<32x128xf32>
    %28 = arith.addf %17, %26 : vector<32x128xf32>
    %c0_18 = arith.constant 0 : index
    %c0_19 = arith.constant 0 : index
    %c2 = arith.constant 2 : index
    %c0_20 = arith.constant 0 : index
    %c0_21 = arith.constant 0 : index
    %29 = vector.load %arg2[%c0_18, %c0_19, %c2, %c0_20, %c0_21] : memref<1x2x3x16x128xf32, #tpu.memory_space<vmem>>, vector<1x2x1x16x128xf32>
    %30 = vector.shape_cast %29 : vector<1x2x1x16x128xf32> to vector<2x16x128xf32>
    %31 = vector.shape_cast %30 : vector<2x16x128xf32> to vector<32x128xf32>
    %c1_i32_22 = arith.constant 1 : i32
    %32 = tpu.dynamic_rotate %31 by %c1_i32_22 dim 1 : vector<32x128xf32>, i32 -> vector<32x128xf32>
    %33 = arith.subf %31, %32 : vector<32x128xf32>
    %34 = math.absf %33 : vector<32x128xf32>
    %c1_i32_23 = arith.constant 1 : i32
    %35 = tpu.dynamic_rotate %31 by %c1_i32_23 dim 0 : vector<32x128xf32>, i32 -> vector<32x128xf32>
    %36 = arith.subf %31, %35 : vector<32x128xf32>
    %37 = math.absf %36 : vector<32x128xf32>
    %38 = arith.addf %27, %34 : vector<32x128xf32>
    %39 = arith.addf %28, %37 : vector<32x128xf32>
    %cst = arith.constant -0.333333343 : f32
    %40 = vector.broadcast %cst : f32 to vector<32x128xf32>
    %41 = arith.mulf %40, %38 : vector<32x128xf32>
    %42 = math.exp %41 : vector<32x128xf32>
    %cst_24 = arith.constant -0.333333343 : f32
    %43 = vector.broadcast %cst_24 : f32 to vector<32x128xf32>
    %44 = arith.mulf %43, %39 : vector<32x128xf32>
    %45 = math.exp %44 : vector<32x128xf32>
    %46 = arith.mulf %5, %42 : vector<32x128xf32>
    %47 = vector.shape_cast %46 : vector<32x128xf32> to vector<2x16x128xf32>
    %48 = arith.mulf %8, %45 : vector<32x128xf32>
    %49 = vector.shape_cast %48 : vector<32x128xf32> to vector<2x16x128xf32>
    %50 = tpu.iota {dimensions = array<i32: 2>} : vector<2x16x128xi32>
    %51 = tpu.iota {dimensions = array<i32: 1>} : vector<2x16x128xi32>
    %c0_i32 = arith.constant 0 : i32
    %52 = vector.broadcast %c0_i32 : i32 to vector<2x16x128xi32>
    %53 = arith.cmpi sgt, %50, %52 : vector<2x16x128xi32>
    %cst_25 = arith.constant 0.000000e+00 : f32
    %54 = vector.broadcast %cst_25 : f32 to vector<2x16x128xf32>
    %55 = arith.select %53, %47, %54 : vector<2x16x128xi1>, vector<2x16x128xf32>
    %c0_i32_26 = arith.constant 0 : i32
    %56 = vector.broadcast %c0_i32_26 : i32 to vector<2x16x128xi32>
    %57 = arith.cmpi sgt, %51, %56 : vector<2x16x128xi32>
    %cst_27 = arith.constant 0.000000e+00 : f32
    %58 = vector.broadcast %cst_27 : f32 to vector<2x16x128xf32>
    %59 = arith.select %57, %49, %58 : vector<2x16x128xi1>, vector<2x16x128xf32>
    %60 = arith.addf %55, %59 : vector<2x16x128xf32>
    %c0_28 = arith.constant 0 : index
    %c0_29 = arith.constant 0 : index
    %c0_30 = arith.constant 0 : index
    %c0_31 = arith.constant 0 : index
    %61 = vector.load %arg3[%c0_28, %c0_29, %c0_30, %c0_31] : memref<1x2x16x128xf32, #tpu.memory_space<vmem>>, vector<1x2x16x128xf32>
    %62 = vector.shape_cast %61 : vector<1x2x16x128xf32> to vector<2x16x128xf32>
    %63 = vector.shape_cast %60 : vector<2x16x128xf32> to vector<1x2x16x128xf32>
    tpu.vector_store %arg3[%c0_28, %c0_29, %c0_30, %c0_31], %63 {strides = array<i32>} : memref<1x2x16x128xf32, #tpu.memory_space<vmem>>, vector<1x2x16x128xf32>,
    return
  }
  func.func @transform_0(%arg0: i32) -> (i32, i32, i32, i32, i32) {
    %c0_i32 = arith.constant 0 : i32
    %c0_i32_0 = arith.constant 0 : i32
    %c0_i32_1 = arith.constant 0 : i32
    %c0_i32_2 = arith.constant 0 : i32
    %c0_i32_3 = arith.constant 0 : i32
    return %arg0, %c0_i32, %c0_i32_0, %c0_i32_1, %c0_i32_2 : i32, i32, i32, i32, i32
  }
  func.func @transform_1(%arg0: i32) -> (i32, i32, i32, i32, i32) {
    %c0_i32 = arith.constant 0 : i32
    %c0_i32_0 = arith.constant 0 : i32
    %c0_i32_1 = arith.constant 0 : i32
    %c0_i32_2 = arith.constant 0 : i32
    %c0_i32_3 = arith.constant 0 : i32
    return %arg0, %c0_i32, %c0_i32_0, %c0_i32_1, %c0_i32_2 : i32, i32, i32, i32, i32
  }
  func.func @transform_2(%arg0: i32) -> (i32, i32, i32, i32) {
    %c0_i32 = arith.constant 0 : i32
    %c0_i32_0 = arith.constant 0 : i32
    %c0_i32_1 = arith.constant 0 : i32
    %c0_i32_2 = arith.constant 0 : i32
    return %arg0, %c0_i32, %c0_i32_0, %c0_i32_1 : i32, i32, i32, i32
  }
}

</mosaic_0001>

<bundles_post_ra>
// kernel: tpu_custom_call.1
= control target key start
LH: loop header
LB: loop body
LE: loop exit
PB: predicated region body
PF: predicated region fallthrough
CT: control target
= control target key end

     0   :  { %7 = vsyncpa [#allocation3], 0  ;;  %s582_s0 = inlined_call_operand.hbm [shape: f32[1,2,1,16,128], index: 0, kind: input, shape index: {}]   ;;  %s583_s1 = inlined_call_operand.hbm [shape: f32[1,2,3,16,128], index: 1, kind: input, shape index: {}]   ;;  %s584_s2 = inlined_call_operand.hbm [shape: f32[1,2,16,128], index: 2, kind: output, shape index: {}]  }
   0x1   :  { %8 = vsyncpa [#allocation6], 0 }
   0x2   :  { %9 = vsyncpa [#allocation4], 0  ;;  %s371_s9 = smov [#allocation2]   ;;  %s299_s13 = scalar_lea.hbm %s582_s0, 512 }
   0x3   :  { %s15_s10 = sshll.u32 %s371_s9, 4  ;;  %p300_p0 = scmp.ne.s32.totalorder %s582_s0, %s299_s13  ;;  %s16_s10 = int_to_ptr.vmem [resolvable:$true] %s15_s10 }
   0x4   :  { %p303_p1 = scmp.lt.u32.totalorder %s299_s13, %s582_s0 }
   0x6   :  { %p305_p2 = pnand %p303_p1, %p300_p0 }
   0x8   :  { %308 = shalt.err (!%p305_p2)
}
   0x9   :  { %s309_s18 = scalar_lea.vmem %s16_s10, 512  ;;  %p314_p4 = scmp.lt.s32.totalorder %s16_s10, %s16_s10 }
   0xa   :  { %p310_p3 = scmp.ne.s32.totalorder %s16_s10, %s309_s18  ;;  %p315_p5 = scmp.lt.s32.totalorder %s309_s18, %s309_s18 }
   0xc   :  { %p316_p6 = por %p315_p5, %p314_p4 }
   0xe   :  { %p317_p7 = pnand %p316_p6, %p310_p3 }
  0x10   :  { %320 = shalt.err (!%p317_p7)
}
  0x11   :  { %s372_s19 = smov 128   ;;  %s373_s20 = smov 8  }
  0x12   :  { %21 = dma.hbm_to_vmem [thread:$0]  %s582_s0, 512, %s16_s10, [#allocation3], %s372_s19, %s372_s19, %s373_s20  }
  0x13   :  { %s374_s23 = smov [#allocation5]   ;;  %s321_s27 = scalar_lea.hbm %s583_s1, 1536 }
  0x14   :  { %s27_s24 = sshll.u32 %s374_s23, 4  ;;  %p322_p8 = scmp.ne.s32.totalorder %s583_s1, %s321_s27  ;;  %s28_s24 = int_to_ptr.vmem [resolvable:$true] %s27_s24 }
  0x15   :  { %p325_p9 = scmp.lt.u32.totalorder %s321_s27, %s583_s1 }
  0x17   :  { %p327_p10 = pnand %p325_p9, %p322_p8 }
  0x19   :  { %330 = shalt.err (!%p327_p10)
}
  0x1a   :  { %s331_s4 = scalar_lea.vmem %s28_s24, 1536  ;;  %p336_p12 = scmp.lt.s32.totalorder %s28_s24, %s28_s24 }
  0x1b   :  { %p332_p11 = scmp.ne.s32.totalorder %s28_s24, %s331_s4  ;;  %p337_p13 = scmp.lt.s32.totalorder %s331_s4, %s331_s4 }
  0x1d   :  { %p338_p0 = por %p337_p13, %p336_p12 }
  0x1f   :  { %p339_p1 = pnand %p338_p0, %p332_p11 }
  0x21   :  { %342 = shalt.err (!%p339_p1)
}
  0x22   :  { %33 = dma.hbm_to_vmem [thread:$0]  %s583_s1, 1536, %s28_s24, [#allocation6], %s372_s19, %s372_s19, %s373_s20  }
  0x23   :  { %365 = dma.done.wait [#allocation3], 512  }
  0x24   :  { %366 = vsyncadd [#allocation3], 4294966784 }
  0x25   :  { %367 = dma.done.wait [#allocation6], 1536  }
  0x26   :  { %368 = vsyncadd [#allocation6], 4294965760  ;;  %v422_v0 = vld [vmem:[#allocation5 + $0x30] sm:$0xff]  ;;  %v424_v1 = vld [vmem:[#allocation5] sm:$0xff]  ;;  %s375_s6 = smov 1   ;;  %v64_v16 = vlaneseq  ;;  %s376_s1 = smov [#allocation7]  }
  0x27   :  { %87 = vrot.lane.b32.xlu1 %v422_v0, %s375_s6  ;;  %83 = vrot.lane.b32.xlu0 %v424_v1, %s375_s6  ;;  %v428_v2 = vld [vmem:[#allocation5 + $0x38] sm:$0xff]  ;;  %v430_v3 = vld [vmem:[#allocation5 + $0x8] sm:$0xff]  ;;  %v436_v5 = vld [vmem:[#allocation5 + $0x10] sm:$0xff]  ;;  %v99_v18 = vrot.slane %v424_v1, 7  ;;  %v101_v24 = vrot.slane %v422_v0, 7  ;;  %s264_s7 = sshll.u32 %s376_s1, 4  ;;  %s265_s7 = int_to_ptr.vmem [resolvable:$true] %s264_s7 }
  0x28   :  { %v434_v4 = vld [vmem:[#allocation5 + $0x18] sm:$0xff]  ;;  %v440_v6 = vld [vmem:[#allocation5 + $0x48] sm:$0xff]  ;;  %v442_v7 = vld [vmem:[#allocation5 + $0x40] sm:$0xff]  ;;  %v471_v17 = vshrl.u32 %v64_v16, 7  ;;  %v100_v19 = vrot.slane %v430_v3, 7  ;;  %v136_v21 = vrot.slane %v436_v5, 7  ;;  %p348_p3 = scmp.lt.s32.totalorder %s265_s7, %s265_s7 }
  0x29   :  { %v446_v8 = vld [vmem:[#allocation5 + $0x28] sm:$0xff]  ;;  %v448_v9 = vld [vmem:[#allocation5 + $0x20] sm:$0xff]  ;;  %v452_v10 = vld [vmem:[#allocation5 + $0x58] sm:$0xff]  ;;  %v137_v20 = vrot.slane %v434_v4, 7  ;;  %v102_v22 = vrot.slane %v428_v2, 7  ;;  %v139_v23 = vrot.slane %v440_v6, 7 }
  0x2a   :  { %v454_v11 = vld [vmem:[#allocation5 + $0x50] sm:$0xff]  ;;  %v458_v12 = vld [vmem:[#allocation2 + $0x8] sm:$0xff]  ;;  %v460_v13 = vld [vmem:[#allocation2] sm:$0xff]  ;;  %vm66_vm0 = vcmp.lt.s32.totalorder %v471_v17, 1  ;;  %v138_v25 = vrot.slane %v442_v7, 7  ;;  %v182_v28 = vrot.slane %v446_v8, 7 }
  0x2b   :  { %89 = vrot.lane.b32.xlu1 %v428_v2, %s375_s6  ;;  %85 = vrot.lane.b32.xlu0 %v430_v3, %s375_s6  ;;  %v464_v14 = vld [vmem:[#allocation2 + $0x18] sm:$0xff]  ;;  %v466_v15 = vld [vmem:[#allocation2 + $0x10] sm:$0xff]  ;;  %v105_v26 = vsel %vm66_vm0, %v99_v18, %v100_v19  ;;  %v142_v27 = vsel %vm66_vm0, %v136_v21, %v137_v20  ;;  %v181_v29 = vrot.slane %v448_v9, 7  ;;  %v106_v30 = vsel %vm66_vm0, %v102_v22, %v99_v18  ;;  %s343_s8 = scalar_lea.vmem %s265_s7, 512 }
  0x2c   :  { %v143_v31 = vsel %vm66_vm0, %v139_v23, %v136_v21  ;;  %v184_v32 = vrot.slane %v452_v10, 7  ;;  %v103_v33 = vsel %vm66_vm0, %v101_v24, %v102_v22  ;;  %v104_v34 = vsel %vm66_vm0, %v100_v19, %v101_v24  ;;  %p344_p2 = scmp.ne.s32.totalorder %s265_s7, %s343_s8  ;;  %p349_p4 = scmp.lt.s32.totalorder %s343_s8, %s343_s8 }
  0x2d   :  { %v108_v35 = vsub.f32 %v430_v3, %v105_v26  ;;  %v145_v36 = vsub.f32 %v434_v4, %v142_v27  ;;  %v141_v37 = vsel %vm66_vm0, %v137_v20, %v138_v25  ;;  %v183_v38 = vrot.slane %v454_v11, 7 }
  0x2e   :  { %v107_v39 = vsub.f32 %v424_v1, %v106_v30  ;;  %v144_v40 = vsub.f32 %v436_v5, %v143_v31  ;;  %v187_v41 = vsel %vm66_vm0, %v181_v29, %v182_v28  ;;  %v140_v42 = vsel %vm66_vm0, %v138_v25, %v139_v23  ;;  %p350_p5 = por %p349_p4, %p348_p3 }
  0x2f   :  { %122 = vrot.lane.b32.xlu1 %v434_v4, %s375_s6  ;;  %120 = vrot.lane.b32.xlu0 %v436_v5, %s375_s6  ;;  %v188_v43 = vsel %vm66_vm0, %v184_v32, %v181_v29  ;;  %v110_v44 = vsub.f32 %v428_v2, %v103_v33  ;;  %v109_v45 = vsub.f32 %v422_v0, %v104_v34  ;;  %v112_v49 = vand.u32 2147483647, %v108_v35 }
  0x30   :  { %v146_v46 = vsub.f32 %v442_v7, %v141_v37  ;;  %v149_v50 = vand.u32 2147483647, %v145_v36  ;;  %v190_v51 = vsub.f32 %v446_v8, %v187_v41  ;;  %v186_v52 = vsel %vm66_vm0, %v182_v28, %v183_v38  ;;  %p351_p6 = pnand %p350_p5, %p344_p2 }
  0x31   :  { %v111_v53 = vand.u32 2147483647, %v107_v39  ;;  %v148_v54 = vand.u32 2147483647, %v144_v40  ;;  %v147_v55 = vsub.f32 %v440_v6, %v140_v42  ;;  %v189_v56 = vsub.f32 %v448_v9, %v188_v43 }
  0x32   :  { %v185_v57 = vsel %vm66_vm0, %v183_v38, %v184_v32  ;;  %v113_v58 = vand.u32 2147483647, %v109_v45  ;;  %v150_v59 = vand.u32 2147483647, %v146_v46  ;;  %v191_v60 = vsub.f32 %v454_v11, %v186_v52 }
  0x33   :  { %126 = vrot.lane.b32.xlu1 %v440_v6, %s375_s6  ;;  %124 = vrot.lane.b32.xlu0 %v442_v7, %s375_s6  ;;  %v114_v63 = vand.u32 2147483647, %v110_v44  ;;  %v157_v18 = vadd.f32 %v149_v50, %v112_v49  ;;  %v194_v19 = vand.u32 2147483647, %v190_v51  ;;  %v156_v20 = vadd.f32 %v148_v54, %v111_v53 }
  0x34   :  { %v151_v21 = vand.u32 2147483647, %v147_v55  ;;  %v193_v22 = vand.u32 2147483647, %v189_v56  ;;  %v192_v23 = vsub.f32 %v452_v10, %v185_v57  ;;  %v158_v24 = vadd.f32 %v150_v59, %v113_v58 }
  0x35   :  { %v195_v25 = vand.u32 2147483647, %v191_v60  ;;  %v202_v28 = vadd.f32 %v194_v19, %v157_v18  ;;  %v61_v42 = vrot.slane %v458_v12, 7  ;;  %v60_v44 = vrot.slane %v460_v13, 7 }
  0x36   :  { %v159_v29 = vadd.f32 %v151_v21, %v114_v63  ;;  %v201_v30 = vadd.f32 %v193_v22, %v156_v20  ;;  %v196_v31 = vand.u32 2147483647, %v192_v23  ;;  %v63_v45 = vrot.slane %v464_v14, 7 }
  0x37   :  { %167 = vrot.lane.b32.xlu1 %v446_v8, %s375_s6  ;;  %165 = vrot.lane.b32.xlu0 %v448_v9, %s375_s6  ;;  %v203_v34 = vadd.f32 %v195_v25, %v158_v24  ;;  %v218_v38 = vmul.f32 -0.33333334, %v202_v28  ;;  %vm245_vm1 = vcmp.gt.s32.totalorder %v471_v17, 0 }
  0x38   :  { %v217_v40 = vmul.f32 -0.33333334, %v201_v30  ;;  %v204_v41 = vadd.f32 %v196_v31, %v159_v29 }
  0x39   :  { %v219_v46 = vmul.f32 -0.33333334, %v203_v34 }
  0x3a   :  { %v221_v55 = vmul.f32 1.442695, %v217_v40  ;;  %v220_v56 = vmul.f32 -0.33333334, %v204_v41 }
  0x3b   :  { %171 = vrot.lane.b32.xlu1 %v452_v10, %s375_s6  ;;  %169 = vrot.lane.b32.xlu0 %v454_v11, %s375_s6 }
  0x3c   :  { %283 = vpow2.f32 %v221_v55  ;;  %v227_v21 = vmul.f32 1.442695, %v220_v56 }
  0x3f   :  { %46 = vrot.lane.b32.xlu1 %v458_v12, %s375_s6  ;;  %44 = vrot.lane.b32.xlu0 %v460_v13, %s375_s6 }
  0x43   :  { %50 = vrot.lane.b32.xlu1 %v464_v14, %s375_s6  ;;  %48 = vrot.lane.b32.xlu0 %v466_v15, %s375_s6 }
  0x99   :  { %v513_v47 = vpop.permute.xlu1 %87  ;;  %v84_v48 = vpop.permute.xlu0 %83 }
  0x9a   :  { %v91_v39 = vsub.f32 %v424_v1, %v84_v48  ;;  %v223_v48 = vmul.f32 1.442695, %v218_v38  ;;  %v93_v57 = vsub.f32 %v422_v0, %v513_v47  ;;  %v62_v0 = vrot.slane %v466_v15, 7 }
  0x9c   :  { %v95_v52 = vand.u32 2147483647, %v91_v39  ;;  %v97_v47 = vand.u32 2147483647, %v93_v57  ;;  %285 = vpow2.f32 %v223_v48 }
  0x9d   :  { %v90_v61 = vpop.permute.xlu1 %89  ;;  %v86_v62 = vpop.permute.xlu0 %85 }
  0x9e   :  { %v92_v35 = vsub.f32 %v430_v3, %v86_v62  ;;  %v94_v3 = vsub.f32 %v428_v2, %v90_v61  ;;  %v225_v61 = vmul.f32 1.442695, %v219_v46 }
  0xa0   :  { %v96_v49 = vand.u32 2147483647, %v92_v35  ;;  %287 = vpow2.f32 %v225_v61 }
  0xa1   :  { %v123_v26 = vpop.permute.xlu1 %122  ;;  %v121_v27 = vpop.permute.xlu0 %120  ;;  %289 = vpow2.f32 %v227_v21 }
  0xa2   :  { %v129_v32 = vsub.f32 %v434_v4, %v123_v26  ;;  %v128_v33 = vsub.f32 %v436_v5, %v121_v27  ;;  %v70_v26 = vsel %vm66_vm0, %v63_v45, %v60_v44 }
  0xa3   :  { %v71_v35 = vsub.f32 %v460_v13, %v70_v26 }
  0xa4   :  { %v133_v43 = vand.u32 2147483647, %v129_v32  ;;  %v132_v4 = vand.u32 2147483647, %v128_v33  ;;  %v69_v32 = vsel %vm66_vm0, %v60_v44, %v61_v42 }
  0xa5   :  { %v127_v36 = vpop.permute.xlu1 %126  ;;  %v125_v37 = vpop.permute.xlu0 %124  ;;  %v72_v39 = vsub.f32 %v458_v12, %v69_v32 }
  0xa6   :  { %v131_v5 = vsub.f32 %v440_v6, %v127_v36  ;;  %v130_v50 = vsub.f32 %v442_v7, %v125_v37  ;;  %v153_v6 = vadd.f32 %v133_v43, %v96_v49  ;;  %v152_v58 = vadd.f32 %v132_v4, %v95_v52 }
  0xa7   :  { %v98_v7 = vand.u32 2147483647, %v94_v3  ;;  %v68_v36 = vsel %vm66_vm0, %v61_v42, %v62_v0  ;;  %v67_v43 = vsel %vm66_vm0, %v62_v0, %v63_v45  ;;  %v284_v3 = vpop.eup %283  ;;  %v238_v49 = vand.u32 127, %v64_v16 }
  0xa8   :  { %v135_v59 = vand.u32 2147483647, %v131_v5  ;;  %v134_v62 = vand.u32 2147483647, %v130_v50  ;;  %v73_v44 = vsub.f32 %v466_v15, %v68_v36  ;;  %v75_v5 = vand.u32 2147483647, %v71_v35 }
  0xa9   :  { %v168_v51 = vpop.permute.xlu1 %167  ;;  %v166_v1 = vpop.permute.xlu0 %165  ;;  %v76_v50 = vand.u32 2147483647, %v72_v39  ;;  %vm240_vm2 = vcmp.gt.s32.totalorder %v238_v49, 0 }
  0xaa   :  { %v174_v53 = vsub.f32 %v446_v8, %v168_v51  ;;  %v173_v54 = vsub.f32 %v448_v9, %v166_v1  ;;  %v155_v22 = vadd.f32 %v135_v59, %v98_v7  ;;  %v154_v27 = vadd.f32 %v134_v62, %v97_v47  ;;  %v286_v1 = vpop.eup %285 }
  0xab   :  { %v74_v51 = vsub.f32 %v464_v14, %v67_v43  ;;  %v288_v45 = vpop.eup %287  ;;  %v77_v52 = vand.u32 2147483647, %v73_v44  ;;  %v234_v57 = vmul.f32 %v286_v1, %v76_v50 }
  0xac   :  { %v178_v2 = vand.u32 2147483647, %v174_v53  ;;  %v177_v60 = vand.u32 2147483647, %v173_v54  ;;  %v233_v54 = vmul.f32 %v284_v3, %v75_v5  ;;  %v290_v55 = vpop.eup %289 }
  0xad   :  { %v172_v63 = vpop.permute.xlu1 %171  ;;  %v170_v18 = vpop.permute.xlu0 %169  ;;  %v78_v16 = vand.u32 2147483647, %v74_v51 }
  0xae   :  { %v198_v19 = vadd.f32 %v178_v2, %v153_v6  ;;  %v197_v20 = vadd.f32 %v177_v60, %v152_v58  ;;  %v176_v8 = vsub.f32 %v452_v10, %v172_v63  ;;  %v175_v9 = vsub.f32 %v454_v11, %v170_v18 }
  0xaf   :  { %v235_v60 = vmul.f32 %v288_v45, %v77_v52  ;;  %v236_v18 = vmul.f32 %v290_v55, %v78_v16 }
  0xb0   :  { %v206_v23 = vmul.f32 -0.33333334, %v198_v19  ;;  %v205_v24 = vmul.f32 -0.33333334, %v197_v20  ;;  %v180_v25 = vand.u32 2147483647, %v176_v8 }
  0xb1   :  { %v179_v28 = vand.u32 2147483647, %v175_v9  ;;  %v47_v11 = vpop.permute.xlu1 %46  ;;  %v45_v33 = vpop.permute.xlu0 %44  ;;  %v249_v9 = vsel %vm245_vm1, %v235_v60, 0.0 }
  0xb2   :  { %v211_v29 = vmul.f32 1.442695, %v206_v23  ;;  %v209_v10 = vmul.f32 1.442695, %v205_v24  ;;  %v200_v30 = vadd.f32 %v180_v25, %v155_v22  ;;  %v53_v41 = vsub.f32 %v458_v12, %v47_v11 }
  0xb3   :  { %v199_v31 = vadd.f32 %v179_v28, %v154_v27  ;;  %v52_v4 = vsub.f32 %v460_v13, %v45_v33 }
  0xb4   :  { %291 = vpow2.f32 %v211_v29  ;;  %v208_v34 = vmul.f32 -0.33333334, %v200_v30  ;;  %v57_v12 = vand.u32 2147483647, %v53_v41 }
  0xb5   :  { %293 = vpow2.f32 %v209_v10  ;;  %v207_v37 = vmul.f32 -0.33333334, %v199_v31  ;;  %v51_v46 = vpop.permute.xlu1 %50  ;;  %v49_v42 = vpop.permute.xlu0 %48  ;;  %v56_v53 = vand.u32 2147483647, %v52_v4 }
  0xb6   :  { %v215_v38 = vmul.f32 1.442695, %v208_v34  ;;  %v55_v48 = vsub.f32 %v464_v14, %v51_v46  ;;  %v54_v13 = vsub.f32 %v466_v15, %v49_v42  ;;  %v247_v14 = vsel %vm245_vm1, %v233_v54, 0.0 }
  0xb7   :  { %v213_v40 = vmul.f32 1.442695, %v207_v37 }
  0xb8   :  { %295 = vpow2.f32 %v215_v38  ;;  %v59_v59 = vand.u32 2147483647, %v55_v48  ;;  %v58_v61 = vand.u32 2147483647, %v54_v13 }
  0xb9   :  { %297 = vpow2.f32 %v213_v40 }
  0xbe   :  { %v292_v56 = vpop.eup %291 }
  0xbf   :  { %v294_v6 = vpop.eup %293  ;;  %v230_v58 = vmul.f32 %v292_v56, %v57_v12 }
  0xc0   :  { %v229_v2 = vmul.f32 %v294_v6, %v56_v53 }
  0xc1   :  { %v242_v7 = vsel %vm240_vm2, %v230_v58, 0.0 }
  0xc2   :  { %v296_v62 = vpop.eup %295  ;;  %v252_v15 = vadd.f32 %v242_v7, %v234_v57  ;;  %v241_v63 = vsel %vm240_vm2, %v229_v2, 0.0 }
  0xc3   :  { %v298_v19 = vpop.eup %297  ;;  %v251_v20 = vadd.f32 %v247_v14, %v241_v63  ;;  %v232_v8 = vmul.f32 %v296_v62, %v59_v59 }
  0xc4   :  { %256 = vst [vmem:[#allocation7 + $0x8] sm:$0xff] %v252_v15  ;;  %v231_v21 = vmul.f32 %v298_v19, %v58_v61 }
  0xc5   :  { %255 = vst [vmem:[#allocation7] sm:$0xff] %v251_v20  ;;  %v244_v0 = vsel %vm240_vm2, %v232_v8, 0.0 }
  0xc6   :  { %v254_v47 = vadd.f32 %v244_v0, %v236_v18  ;;  %v243_v22 = vsel %vm240_vm2, %v231_v21, 0.0 }
  0xc7   :  { %v253_v23 = vadd.f32 %v249_v9, %v243_v22 }
  0xc8   :  { %258 = vst [vmem:[#allocation7 + $0x18] sm:$0xff] %v254_v47 }
  0xc9   :  { %257 = vst [vmem:[#allocation7 + $0x10] sm:$0xff] %v253_v23 }
  0xca   :  { %354 = shalt.err (!%p351_p6)
}
  0xcb   :  { %s355_s11 = scalar_lea.hbm %s584_s2, 512 }
  0xcc   :  { %p356_p7 = scmp.ne.s32.totalorder %s584_s2, %s355_s11  ;;  %p359_p8 = scmp.lt.u32.totalorder %s355_s11, %s584_s2 }
  0xce   :  { %p361_p9 = pnand %p359_p8, %p356_p7 }
  0xd0   :  { %364 = shalt.err (!%p361_p9)
}
  0xd1   :  { %270 = dma.vmem_to_hbm [thread:$0]  %s265_s7, 512, %s584_s2, [#allocation4], %s372_s19, %s372_s19, %s373_s20  }
  0xd2   :  { %369 = dma.done.wait [#allocation4], 512  }
  0xd3   :  { %370 = vsyncadd [#allocation4], 4294966784 }
  0xd4   :  { %274 = vsyncpa [#allocation3], 1 }
  0xd5   :  { %275 = vsyncpa [#allocation6], 1 }
  0xd6   :  { %276 = vsyncpa [#allocation4], 1 }

</bundles_post_ra>
